<compile_context>
chip_gen: v7x
topology: tpu7x:2x2x1
jax: 0.10.0
libtpu: 0.0.40
codegen_flags: <defaults>
</compile_context>

<pallas_src>
import math
import jax
import jax.numpy as jnp
from jax.experimental import pallas as pl
from jax.experimental.pallas import tpu as pltpu

# ----------------------------- config ---------------------------------------
B = 2            # batch
T = 8            # sequence length (== block_size)
C = 32           # n_embd
H = 4            # n_head
HS = C // H      # head_size
MAX_REL = 4      # max_relative_distance
NUM_BUCKETS = 2 * MAX_REL + 1
FF = 4 * C       # feed-forward hidden
EPS = 1e-5       # LayerNorm eps (PyTorch default)
NEG = -1e30      # "minus infinity" for masked logits


# ----------------------------- kernel ---------------------------------------
def block_kernel(x_ref,      # (T, C)        tokens of ONE batch (grid axis 0)
                 small_ref,  # (7, FF)       rows 0-5: g1,b1,bp,g2,b2,bf2 (cols 0:C); row 6: bf1
                 bias_ref,   # (H, T, T)     rel-pos bias, causal mask folded in
                 wa_ref,     # (C, 4C+FF)    [wq*HS**-0.5 | wk | wv | wp | w1]
                 w2_ref,     # (FF, C)
                 o_ref):     # (T, C)
    f32 = jnp.float32
    x = x_ref[...].astype(f32)

    g1 = small_ref[0:1, 0:C]
    b1 = small_ref[1:2, 0:C]
    bp = small_ref[2:3, 0:C]
    g2 = small_ref[3:4, 0:C]
    b2 = small_ref[4:5, 0:C]
    bf2 = small_ref[5:6, 0:C]
    bf1 = small_ref[6:7, :]

    # ---- LayerNorm 1 ----
    mu = jnp.mean(x, axis=-1, keepdims=True)
    var = jnp.mean((x - mu) ** 2, axis=-1, keepdims=True)
    xn = (x - mu) * jax.lax.rsqrt(var + EPS) * g1 + b1

    # ---- fused QKV projection: one (T,C)@(C,3C) MXU push ----
    qkv = jnp.dot(xn, wa_ref[:, 0:3 * C], preferred_element_type=f32)     # (T, 3C)

    # head-batched q/k/v (H, T, HS) via static lane slices + stack
    q = jnp.stack([qkv[:, h * HS:(h + 1) * HS] for h in range(H)], axis=0)
    k = jnp.stack([qkv[:, C + h * HS:C + (h + 1) * HS] for h in range(H)], axis=0)
    v = jnp.stack([qkv[:, 2 * C + h * HS:2 * C + (h + 1) * HS] for h in range(H)], axis=0)

    # ---- head-batched attention (scale folded into wq, causal mask in bias) ----
    s = jnp.einsum('hqd,hkd->hqk', q, k, preferred_element_type=f32)      # (H, T, T)
    s = s + bias_ref[...]
    s = s - jnp.max(s, axis=-1, keepdims=True)
    p = jnp.exp(s)
    p = p / jnp.sum(p, axis=-1, keepdims=True)        # exact divide (tight f32 agreement)
    # (attention / projection / FF dropout are identity at inference)

    o = jnp.einsum('hqk,hkd->hqd', p, v, preferred_element_type=f32)      # (H, T, HS)
    heads = jnp.concatenate([o[h] for h in range(H)], axis=-1)            # (T, C)

    # ---- single fused output projection ----
    attn = jnp.dot(heads, wa_ref[:, 3 * C:4 * C], preferred_element_type=f32)
    x1 = x + attn + bp                                 # residual 1 (+ proj bias)

    # ---- LayerNorm 2 ----
    mu2 = jnp.mean(x1, axis=-1, keepdims=True)
    var2 = jnp.mean((x1 - mu2) ** 2, axis=-1, keepdims=True)
    xn2 = (x1 - mu2) * jax.lax.rsqrt(var2 + EPS) * g2 + b2

    # ---- feed-forward ----
    h1 = jnp.maximum(
        jnp.dot(xn2, wa_ref[:, 4 * C:4 * C + FF], preferred_element_type=f32) + bf1, 0.0)
    ff = jnp.dot(h1, w2_ref[...], preferred_element_type=f32) + bf2

    o_ref[...] = (x1 + ff).astype(o_ref.dtype)         # residual 2


# ----------------------------- wrapper ---------------------------------------
def transformer_block(x, params):
    """x: (B, T, C) float32. params: dict of weights (see init_params)."""
    Bn, Tn, Cn = x.shape

    # Relative position bias (embedding gather is glue, done in plain JAX),
    # causal mask folded in.  Only (H, T, T): does NOT scale with batch.
    pos = jnp.arange(Tn)
    idx = jnp.clip(pos[None, :] - pos[:, None] + MAX_REL, 0, NUM_BUCKETS - 1)
    bias = jnp.transpose(params["rel_emb"][idx], (2, 0, 1)).astype(jnp.float32)  # (H,T,T)
    causal = jnp.tril(jnp.ones((Tn, Tn), bool))
    bias = jnp.where(causal[None], bias, NEG)

    # One fused weight slab; fold the softmax scale into wq.
    scale = HS ** (-0.5)
    wa = jnp.concatenate([params["wq"] * scale, params["wk"], params["wv"],
                          params["wp"], params["w1"]], axis=1)            # (C, 4C+FF)

    # Pack the 7 small per-channel vectors into one slab (1 DMA stream).
    small = jnp.zeros((7, FF), jnp.float32)
    small = small.at[0:6, 0:Cn].set(
        jnp.concatenate([params["g1"], params["b1"], params["bp"],
                         params["g2"], params["b2"], params["bf2"]], axis=0))
    small = small.at[6:7, :].set(params["bf1"])

    out = pl.pallas_call(
        block_kernel,
        out_shape=jax.ShapeDtypeStruct((Bn, Tn, Cn), x.dtype),
        grid_spec=pltpu.PrefetchScalarGridSpec(
            num_scalar_prefetch=0,
            grid=(Bn,),                                   # batch on the grid
            in_specs=[
                pl.BlockSpec((None, Tn, Cn), lambda b: (b, 0, 0)),   # x (per batch)
                pl.BlockSpec((7, FF), lambda b: (0, 0)),             # packed vectors
                pl.BlockSpec((H, Tn, Tn), lambda b: (0, 0, 0)),      # rel bias + causal
                pl.BlockSpec((Cn, 4 * Cn + FF), lambda b: (0, 0)),   # fused weight slab
                pl.BlockSpec((FF, Cn), lambda b: (0, 0)),            # ff W2
            ],
            out_specs=pl.BlockSpec((None, Tn, Cn), lambda b: (b, 0, 0)),
        ),
        compiler_params=pltpu.CompilerParams(
            dimension_semantics=("parallel",),            # v7x: 2 TCs split batches
            vmem_limit_bytes=32 * 1024 * 1024),
    )(x, small, bias, wa, params["w2"])

    return out


def init_params(key):
    ks = jax.random.split(key, 12)
    s = lambda fan_in: 1.0 / math.sqrt(fan_in)
    p = {
        "g1": jnp.ones((1, C), jnp.float32),
        "b1": jnp.zeros((1, C), jnp.float32),
        # per-head K/Q/V linears stacked along output columns -> (C, C)
        "wq": jax.random.uniform(ks[0], (C, C), jnp.float32, -s(C), s(C)),
        "wk": jax.random.uniform(ks[1], (C, C), jnp.float32, -s(C), s(C)),
        "wv": jax.random.uniform(ks[2], (C, C), jnp.float32, -s(C), s(C)),
        "rel_emb": jax.random.normal(ks[3], (NUM_BUCKETS, H), jnp.float32),
        "wp": jax.random.uniform(ks[4], (C, C), jnp.float32, -s(C), s(C)),
        "bp": jax.random.uniform(ks[5], (1, C), jnp.float32, -s(C), s(C)),
        "g2": jnp.ones((1, C), jnp.float32),
        "b2": jnp.zeros((1, C), jnp.float32),
        "w1": jax.random.uniform(ks[6], (C, FF), jnp.float32, -s(C), s(C)),
        "bf1": jax.random.uniform(ks[7], (1, FF), jnp.float32, -s(C), s(C)),
        "w2": jax.random.uniform(ks[8], (FF, C), jnp.float32, -s(FF), s(FF)),
        "bf2": jax.random.uniform(ks[9], (1, C), jnp.float32, -s(FF), s(FF)),
    }
    return p


# pure-JAX reference (mirrors the PyTorch module) for a sanity check
def reference_block(x, params):
    def ln(v, g, b):
        mu = jnp.mean(v, axis=-1, keepdims=True)
        var = jnp.mean((v - mu) ** 2, axis=-1, keepdims=True)
        return (v - mu) / jnp.sqrt(var + EPS) * g[0] + b[0]

    pos = jnp.arange(T)
    idx = jnp.clip(pos[None, :] - pos[:, None] + MAX_REL, 0, NUM_BUCKETS - 1)
    bias = jnp.transpose(params["rel_emb"][idx], (2, 0, 1))   # (H, T, T)

    xn = ln(x, params["g1"], params["b1"])
    q = xn @ params["wq"]; k = xn @ params["wk"]; v = xn @ params["wv"]
    qh = q.reshape(B, T, H, HS).transpose(0, 2, 1, 3)
    kh = k.reshape(B, T, H, HS).transpose(0, 2, 1, 3)
    vh = v.reshape(B, T, H, HS).transpose(0, 2, 1, 3)
    s = jnp.einsum("bhqd,bhkd->bhqk", qh, kh) * HS ** -0.5 + bias[None]
    causal = jnp.tril(jnp.ones((T, T), bool))
    s = jnp.where(causal, s, -jnp.inf)
    p = jax.nn.softmax(s, axis=-1)
    o = jnp.einsum("bhqk,bhkd->bhqd", p, vh).transpose(0, 2, 1, 3).reshape(B, T, C)
    x1 = x + o @ params["wp"] + params["bp"][0]
    xn2 = ln(x1, params["g2"], params["b2"])
    ff = jnp.maximum(xn2 @ params["w1"] + params["bf1"][0], 0.0) @ params["w2"] + params["bf2"][0]
    return x1 + ff


if __name__ == "__main__":
    key = jax.random.PRNGKey(0)
    kx, kp = jax.random.split(key)
    x = jax.random.normal(kx, (B, T, C), jnp.float32)
    params = init_params(kp)

    out = transformer_block(x, params)
    out = jax.block_until_ready(out)

    with jax.default_matmul_precision("highest"):
        ref = reference_block(x, params)

    assert out.shape == (B, T, C)
    # Exact softmax divide (no approx reciprocal) -> tolerance tightened vs. the
    # previous version; remaining slack only covers MXU f32 pass rounding.
    assert jnp.allclose(out, ref, atol=2e-3, rtol=2e-3), "mismatch vs reference"
    print("KERNEL_OK")
</pallas_src>

<mosaic_0001>
module attributes {stable_mosaic.version = 11 : i64} {
  func.func @block_kernel(%arg0: i32, %arg1: memref<1x8x32xf32, #tpu.memory_space<vmem>>, %arg2: memref<7x128xf32, #tpu.memory_space<vmem>>, %arg3: memref<4x8x8xf32, #tpu.memory_space<vmem>>, %arg4: memref<32x256xf32, #tpu.memory_space<vmem>>, %arg5: memref<128x32xf32, #tpu.memory_space<vmem>>, %arg6: memref<1x8x32xf32, #tpu.memory_space<vmem>>) attributes {dimension_semantics = [#tpu.dimension_semantics<parallel>], iteration_bounds = array<i64: 2>, scalar_prefetch = 0 : i64, scratch_operands = 0 : i64, tpu.core_type = #tpu.core_type<tc>, window_params = [{transform_indices = @transform_0, window_bounds = array<i64: 1, 8, 32>}, {pipeline_mode = #tpu.pipeline_mode<synchronous>, transform_indices = @transform_1, window_bounds = array<i64: 7, 128>}, {pipeline_mode = #tpu.pipeline_mode<synchronous>, transform_indices = @transform_2, window_bounds = array<i64: 4, 8, 8>}, {pipeline_mode = #tpu.pipeline_mode<synchronous>, transform_indices = @transform_3, window_bounds = array<i64: 32, 256>}, {pipeline_mode = #tpu.pipeline_mode<synchronous>, transform_indices = @transform_4, window_bounds = array<i64: 128, 32>}, {transform_indices = @transform_5, window_bounds = array<i64: 1, 8, 32>}]} {
    %c0 = arith.constant 0 : index
    %c0_0 = arith.constant 0 : index
    %c0_1 = arith.constant 0 : index
    %0 = vector.load %arg1[%c0, %c0_0, %c0_1] : memref<1x8x32xf32, #tpu.memory_space<vmem>>, vector<1x8x32xf32>
    %1 = vector.shape_cast %0 : vector<1x8x32xf32> to vector<8x32xf32>
    %c0_2 = arith.constant 0 : index
    %c0_3 = arith.constant 0 : index
    %2 = vector.load %arg2[%c0_2, %c0_3] : memref<7x128xf32, #tpu.memory_space<vmem>>, vector<1x32xf32>
    %c1 = arith.constant 1 : index
    %c0_4 = arith.constant 0 : index
    %3 = vector.load %arg2[%c1, %c0_4] : memref<7x128xf32, #tpu.memory_space<vmem>>, vector<1x32xf32>
    %c2 = arith.constant 2 : index
    %c0_5 = arith.constant 0 : index
    %4 = vector.load %arg2[%c2, %c0_5] : memref<7x128xf32, #tpu.memory_space<vmem>>, vector<1x32xf32>
    %c3 = arith.constant 3 : index
    %c0_6 = arith.constant 0 : index
    %5 = vector.load %arg2[%c3, %c0_6] : memref<7x128xf32, #tpu.memory_space<vmem>>, vector<1x32xf32>
    %c4 = arith.constant 4 : index
    %c0_7 = arith.constant 0 : index
    %6 = vector.load %arg2[%c4, %c0_7] : memref<7x128xf32, #tpu.memory_space<vmem>>, vector<1x32xf32>
    %c5 = arith.constant 5 : index
    %c0_8 = arith.constant 0 : index
    %7 = vector.load %arg2[%c5, %c0_8] : memref<7x128xf32, #tpu.memory_space<vmem>>, vector<1x32xf32>
    %c6 = arith.constant 6 : index
    %c0_9 = arith.constant 0 : index
    %8 = vector.load %arg2[%c6, %c0_9] : memref<7x128xf32, #tpu.memory_space<vmem>>, vector<1x128xf32>
    %cst = arith.constant dense<0.000000e+00> : vector<8xf32>
    %9 = vector.multi_reduction <add>, %1, %cst [1] : vector<8x32xf32> to vector<8xf32>
    %10 = vector.shape_cast %9 : vector<8xf32> to vector<8x1xf32>
    %cst_10 = arith.constant 3.200000e+01 : f32
    %11 = vector.broadcast %cst_10 : f32 to vector<8x1xf32>
    %12 = arith.divf %10, %11 : vector<8x1xf32>
    %13 = vector.broadcast %12 : vector<8x1xf32> to vector<8x32xf32>
    %14 = arith.subf %1, %13 : vector<8x32xf32>
    %15 = arith.mulf %14, %14 : vector<8x32xf32>
    %cst_11 = arith.constant dense<0.000000e+00> : vector<8xf32>
    %16 = vector.multi_reduction <add>, %15, %cst_11 [1] : vector<8x32xf32> to vector<8xf32>
    %17 = vector.shape_cast %16 : vector<8xf32> to vector<8x1xf32>
    %cst_12 = arith.constant 3.200000e+01 : f32
    %18 = vector.broadcast %cst_12 : f32 to vector<8x1xf32>
    %19 = arith.divf %17, %18 : vector<8x1xf32>
    %20 = vector.broadcast %12 : vector<8x1xf32> to vector<8x32xf32>
    %21 = arith.subf %1, %20 : vector<8x32xf32>
    %cst_13 = arith.constant 9.99999974E-6 : f32
    %22 = vector.broadcast %cst_13 : f32 to vector<8x1xf32>
    %23 = arith.addf %19, %22 : vector<8x1xf32>
    %24 = math.rsqrt %23 : vector<8x1xf32>
    %25 = vector.broadcast %24 : vector<8x1xf32> to vector<8x32xf32>
    %26 = arith.mulf %21, %25 : vector<8x32xf32>
    %27 = vector.broadcast %2 : vector<1x32xf32> to vector<8x32xf32>
    %28 = arith.mulf %26, %27 : vector<8x32xf32>
    %29 = vector.broadcast %3 : vector<1x32xf32> to vector<8x32xf32>
    %30 = arith.addf %28, %29 : vector<8x32xf32>
    %c0_14 = arith.constant 0 : index
    %c0_15 = arith.constant 0 : index
    %31 = vector.load %arg4[%c0_14, %c0_15] : memref<32x256xf32, #tpu.memory_space<vmem>>, vector<32x96xf32>
    %cst_16 = arith.constant dense<0.000000e+00> : vector<8x96xf32>
    %32 = tpu.matmul %30, %31, %cst_16 {dimension_numbers = #tpu.dot_dimension_numbers<[1], [0], [0], [1], [0, 0, 1, 1], [], []>} : vector<8x32xf32>, vector<32x96xf32>, vector<8x96xf32> -> vector<8x96xf32>
    %33 = vector.extract_strided_slice %32 {offsets = [0, 0], sizes = [8, 8], strides = [1, 1]} : vector<8x96xf32> to vector<8x8xf32>
    %34 = vector.extract_strided_slice %32 {offsets = [0, 8], sizes = [8, 8], strides = [1, 1]} : vector<8x96xf32> to vector<8x8xf32>
    %35 = vector.extract_strided_slice %32 {offsets = [0, 16], sizes = [8, 8], strides = [1, 1]} : vector<8x96xf32> to vector<8x8xf32>
    %36 = vector.extract_strided_slice %32 {offsets = [0, 24], sizes = [8, 8], strides = [1, 1]} : vector<8x96xf32> to vector<8x8xf32>
    %37 = vector.shape_cast %33 : vector<8x8xf32> to vector<1x8x8xf32>
    %38 = vector.shape_cast %34 : vector<8x8xf32> to vector<1x8x8xf32>
    %39 = vector.shape_cast %35 : vector<8x8xf32> to vector<1x8x8xf32>
    %40 = vector.shape_cast %36 : vector<8x8xf32> to vector<1x8x8xf32>
    %41 = tpu.concatenate %37, %38, %39, %40 in 0 : vector<1x8x8xf32>, vector<1x8x8xf32>, vector<1x8x8xf32>, vector<1x8x8xf32> -> vector<4x8x8xf32>
    %42 = vector.extract_strided_slice %32 {offsets = [0, 32], sizes = [8, 8], strides = [1, 1]} : vector<8x96xf32> to vector<8x8xf32>
    %43 = vector.extract_strided_slice %32 {offsets = [0, 40], sizes = [8, 8], strides = [1, 1]} : vector<8x96xf32> to vector<8x8xf32>
    %44 = vector.extract_strided_slice %32 {offsets = [0, 48], sizes = [8, 8], strides = [1, 1]} : vector<8x96xf32> to vector<8x8xf32>
    %45 = vector.extract_strided_slice %32 {offsets = [0, 56], sizes = [8, 8], strides = [1, 1]} : vector<8x96xf32> to vector<8x8xf32>
    %46 = vector.shape_cast %42 : vector<8x8xf32> to vector<1x8x8xf32>
    %47 = vector.shape_cast %43 : vector<8x8xf32> to vector<1x8x8xf32>
    %48 = vector.shape_cast %44 : vector<8x8xf32> to vector<1x8x8xf32>
    %49 = vector.shape_cast %45 : vector<8x8xf32> to vector<1x8x8xf32>
    %50 = tpu.concatenate %46, %47, %48, %49 in 0 : vector<1x8x8xf32>, vector<1x8x8xf32>, vector<1x8x8xf32>, vector<1x8x8xf32> -> vector<4x8x8xf32>
    %51 = vector.extract_strided_slice %32 {offsets = [0, 64], sizes = [8, 8], strides = [1, 1]} : vector<8x96xf32> to vector<8x8xf32>
    %52 = vector.extract_strided_slice %32 {offsets = [0, 72], sizes = [8, 8], strides = [1, 1]} : vector<8x96xf32> to vector<8x8xf32>
    %53 = vector.extract_strided_slice %32 {offsets = [0, 80], sizes = [8, 8], strides = [1, 1]} : vector<8x96xf32> to vector<8x8xf32>
    %54 = vector.extract_strided_slice %32 {offsets = [0, 88], sizes = [8, 8], strides = [1, 1]} : vector<8x96xf32> to vector<8x8xf32>
    %55 = vector.shape_cast %51 : vector<8x8xf32> to vector<1x8x8xf32>
    %56 = vector.shape_cast %52 : vector<8x8xf32> to vector<1x8x8xf32>
    %57 = vector.shape_cast %53 : vector<8x8xf32> to vector<1x8x8xf32>
    %58 = vector.shape_cast %54 : vector<8x8xf32> to vector<1x8x8xf32>
    %59 = tpu.concatenate %55, %56, %57, %58 in 0 : vector<1x8x8xf32>, vector<1x8x8xf32>, vector<1x8x8xf32>, vector<1x8x8xf32> -> vector<4x8x8xf32>
    "tpu.trace_start"() <{level = 10 : i32, message = "hqd,hkd->hqk"}> : () -> ()
    %cst_17 = arith.constant dense<0.000000e+00> : vector<4x8x8xf32>
    %60 = tpu.matmul %41, %50, %cst_17 {dimension_numbers = #tpu.dot_dimension_numbers<[2], [2], [1], [1], [0, 0, 0, 1, 1, 1], [0], [0]>} : vector<4x8x8xf32>, vector<4x8x8xf32>, vector<4x8x8xf32> -> vector<4x8x8xf32>
    "tpu.trace_stop"() : () -> ()
    %c0_18 = arith.constant 0 : index
    %c0_19 = arith.constant 0 : index
    %c0_20 = arith.constant 0 : index
    %61 = vector.load %arg3[%c0_18, %c0_19, %c0_20] : memref<4x8x8xf32, #tpu.memory_space<vmem>>, vector<4x8x8xf32>
    %62 = arith.addf %60, %61 : vector<4x8x8xf32>
    %cst_21 = arith.constant dense<0xFF800000> : vector<4x8xf32>
    %63 = vector.multi_reduction <maximumf>, %62, %cst_21 [2] : vector<4x8x8xf32> to vector<4x8xf32>
    %64 = vector.shape_cast %63 : vector<4x8xf32> to vector<4x8x1xf32>
    %65 = vector.broadcast %64 : vector<4x8x1xf32> to vector<4x8x8xf32>
    %66 = arith.subf %62, %65 : vector<4x8x8xf32>
    %67 = math.exp %66 : vector<4x8x8xf32>
    %cst_22 = arith.constant dense<0.000000e+00> : vector<4x8xf32>
    %68 = vector.multi_reduction <add>, %67, %cst_22 [2] : vector<4x8x8xf32> to vector<4x8xf32>
    %69 = vector.shape_cast %68 : vector<4x8xf32> to vector<4x8x1xf32>
    %70 = vector.broadcast %69 : vector<4x8x1xf32> to vector<4x8x8xf32>
    %71 = arith.divf %67, %70 : vector<4x8x8xf32>
    "tpu.trace_start"() <{level = 10 : i32, message = "hqk,hkd->hqd"}> : () -> ()
    %cst_23 = arith.constant dense<0.000000e+00> : vector<4x8x8xf32>
    %72 = tpu.matmul %71, %59, %cst_23 {dimension_numbers = #tpu.dot_dimension_numbers<[2], [1], [1], [2], [0, 0, 0, 1, 1, 2], [0], [0]>} : vector<4x8x8xf32>, vector<4x8x8xf32>, vector<4x8x8xf32> -> vector<4x8x8xf32>
    "tpu.trace_stop"() : () -> ()
    %73 = vector.extract_strided_slice %72 {offsets = [0, 0, 0], sizes = [1, 8, 8], strides = [1, 1, 1]} : vector<4x8x8xf32> to vector<1x8x8xf32>
    %74 = vector.shape_cast %73 : vector<1x8x8xf32> to vector<8x8xf32>
    %75 = vector.extract_strided_slice %72 {offsets = [1, 0, 0], sizes = [1, 8, 8], strides = [1, 1, 1]} : vector<4x8x8xf32> to vector<1x8x8xf32>
    %76 = vector.shape_cast %75 : vector<1x8x8xf32> to vector<8x8xf32>
    %77 = vector.extract_strided_slice %72 {offsets = [2, 0, 0], sizes = [1, 8, 8], strides = [1, 1, 1]} : vector<4x8x8xf32> to vector<1x8x8xf32>
    %78 = vector.shape_cast %77 : vector<1x8x8xf32> to vector<8x8xf32>
    %79 = vector.extract_strided_slice %72 {offsets = [3, 0, 0], sizes = [1, 8, 8], strides = [1, 1, 1]} : vector<4x8x8xf32> to vector<1x8x8xf32>
    %80 = vector.shape_cast %79 : vector<1x8x8xf32> to vector<8x8xf32>
    %81 = tpu.concatenate %74, %76, %78, %80 in 1 : vector<8x8xf32>, vector<8x8xf32>, vector<8x8xf32>, vector<8x8xf32> -> vector<8x32xf32>
    %c0_24 = arith.constant 0 : index
    %c96 = arith.constant 96 : index
    %82 = vector.load %arg4[%c0_24, %c96] : memref<32x256xf32, #tpu.memory_space<vmem>>, vector<32x32xf32>
    %cst_25 = arith.constant dense<0.000000e+00> : vector<8x32xf32>
    %83 = tpu.matmul %81, %82, %cst_25 {dimension_numbers = #tpu.dot_dimension_numbers<[1], [0], [0], [1], [0, 0, 1, 1], [], []>} : vector<8x32xf32>, vector<32x32xf32>, vector<8x32xf32> -> vector<8x32xf32>
    %84 = arith.addf %1, %83 : vector<8x32xf32>
    %85 = vector.broadcast %4 : vector<1x32xf32> to vector<8x32xf32>
    %86 = arith.addf %84, %85 : vector<8x32xf32>
    %cst_26 = arith.constant dense<0.000000e+00> : vector<8xf32>
    %87 = vector.multi_reduction <add>, %86, %cst_26 [1] : vector<8x32xf32> to vector<8xf32>
    %88 = vector.shape_cast %87 : vector<8xf32> to vector<8x1xf32>
    %cst_27 = arith.constant 3.200000e+01 : f32
    %89 = vector.broadcast %cst_27 : f32 to vector<8x1xf32>
    %90 = arith.divf %88, %89 : vector<8x1xf32>
    %91 = vector.broadcast %90 : vector<8x1xf32> to vector<8x32xf32>
    %92 = arith.subf %86, %91 : vector<8x32xf32>
    %93 = arith.mulf %92, %92 : vector<8x32xf32>
    %cst_28 = arith.constant dense<0.000000e+00> : vector<8xf32>
    %94 = vector.multi_reduction <add>, %93, %cst_28 [1] : vector<8x32xf32> to vector<8xf32>
    %95 = vector.shape_cast %94 : vector<8xf32> to vector<8x1xf32>
    %cst_29 = arith.constant 3.200000e+01 : f32
    %96 = vector.broadcast %cst_29 : f32 to vector<8x1xf32>
    %97 = arith.divf %95, %96 : vector<8x1xf32>
    %98 = vector.broadcast %90 : vector<8x1xf32> to vector<8x32xf32>
    %99 = arith.subf %86, %98 : vector<8x32xf32>
    %cst_30 = arith.constant 9.99999974E-6 : f32
    %100 = vector.broadcast %cst_30 : f32 to vector<8x1xf32>
    %101 = arith.addf %97, %100 : vector<8x1xf32>
    %102 = math.rsqrt %101 : vector<8x1xf32>
    %103 = vector.broadcast %102 : vector<8x1xf32> to vector<8x32xf32>
    %104 = arith.mulf %99, %103 : vector<8x32xf32>
    %105 = vector.broadcast %5 : vector<1x32xf32> to vector<8x32xf32>
    %106 = arith.mulf %104, %105 : vector<8x32xf32>
    %107 = vector.broadcast %6 : vector<1x32xf32> to vector<8x32xf32>
    %108 = arith.addf %106, %107 : vector<8x32xf32>
    %c0_31 = arith.constant 0 : index
    %c128 = arith.constant 128 : index
    %109 = vector.load %arg4[%c0_31, %c128] : memref<32x256xf32, #tpu.memory_space<vmem>>, vector<32x128xf32>
    %cst_32 = arith.constant dense<0.000000e+00> : vector<8x128xf32>
    %110 = tpu.matmul %108, %109, %cst_32 {dimension_numbers = #tpu.dot_dimension_numbers<[1], [0], [0], [1], [0, 0, 1, 1], [], []>} : vector<8x32xf32>, vector<32x128xf32>, vector<8x128xf32> -> vector<8x128xf32>
    %111 = vector.broadcast %8 : vector<1x128xf32> to vector<8x128xf32>
    %112 = arith.addf %110, %111 : vector<8x128xf32>
    %cst_33 = arith.constant 0.000000e+00 : f32
    %113 = vector.broadcast %cst_33 : f32 to vector<8x128xf32>
    %114 = arith.maximumf %112, %113 : vector<8x128xf32>
    %c0_34 = arith.constant 0 : index
    %c0_35 = arith.constant 0 : index
    %115 = vector.load %arg5[%c0_34, %c0_35] : memref<128x32xf32, #tpu.memory_space<vmem>>, vector<128x32xf32>
    %cst_36 = arith.constant dense<0.000000e+00> : vector<8x32xf32>
    %116 = tpu.matmul %114, %115, %cst_36 {dimension_numbers = #tpu.dot_dimension_numbers<[1], [0], [0], [1], [0, 0, 1, 1], [], []>} : vector<8x128xf32>, vector<128x32xf32>, vector<8x32xf32> -> vector<8x32xf32>
    %117 = vector.broadcast %7 : vector<1x32xf32> to vector<8x32xf32>
    %118 = arith.addf %116, %117 : vector<8x32xf32>
    %119 = arith.addf %86, %118 : vector<8x32xf32>
    %c0_37 = arith.constant 0 : index
    %c0_38 = arith.constant 0 : index
    %c0_39 = arith.constant 0 : index
    %120 = vector.load %arg6[%c0_37, %c0_38, %c0_39] : memref<1x8x32xf32, #tpu.memory_space<vmem>>, vector<1x8x32xf32>
    %121 = vector.shape_cast %120 : vector<1x8x32xf32> to vector<8x32xf32>
    %122 = vector.shape_cast %119 : vector<8x32xf32> to vector<1x8x32xf32>
    tpu.vector_store %arg6[%c0_37, %c0_38, %c0_39], %122 {strides = array<i32>} : memref<1x8x32xf32, #tpu.memory_space<vmem>>, vector<1x8x32xf32>,
    return
  }
  func.func @transform_0(%arg0: i32) -> (i32, i32, i32) {
    %c0_i32 = arith.constant 0 : i32
    %c0_i32_0 = arith.constant 0 : i32
    %c0_i32_1 = arith.constant 0 : i32
    return %arg0, %c0_i32, %c0_i32_0 : i32, i32, i32
  }
  func.func @transform_1(%arg0: i32) -> (i32, i32) {
    %c0_i32 = arith.constant 0 : i32
    %c0_i32_0 = arith.constant 0 : i32
    %c0_i32_1 = arith.constant 0 : i32
    return %c0_i32, %c0_i32_0 : i32, i32
  }
  func.func @transform_2(%arg0: i32) -> (i32, i32, i32) {
    %c0_i32 = arith.constant 0 : i32
    %c0_i32_0 = arith.constant 0 : i32
    %c0_i32_1 = arith.constant 0 : i32
    %c0_i32_2 = arith.constant 0 : i32
    return %c0_i32, %c0_i32_0, %c0_i32_1 : i32, i32, i32
  }
  func.func @transform_3(%arg0: i32) -> (i32, i32) {
    %c0_i32 = arith.constant 0 : i32
    %c0_i32_0 = arith.constant 0 : i32
    %c0_i32_1 = arith.constant 0 : i32
    return %c0_i32, %c0_i32_0 : i32, i32
  }
  func.func @transform_4(%arg0: i32) -> (i32, i32) {
    %c0_i32 = arith.constant 0 : i32
    %c0_i32_0 = arith.constant 0 : i32
    %c0_i32_1 = arith.constant 0 : i32
    return %c0_i32, %c0_i32_0 : i32, i32
  }
  func.func @transform_5(%arg0: i32) -> (i32, i32, i32) {
    %c0_i32 = arith.constant 0 : i32
    %c0_i32_0 = arith.constant 0 : i32
    %c0_i32_1 = arith.constant 0 : i32
    return %arg0, %c0_i32, %c0_i32_0 : i32, i32, i32
  }
}

</mosaic_0001>

<bundles_post_ra>
// kernel: tpu_custom_call.1
= control target key start
LH: loop header
LB: loop body
LE: loop exit
PB: predicated region body
PF: predicated region fallthrough
CT: control target
= control target key end

     0   :  { %10 = vsyncpa [#allocation3], 0  ;;  %s2123_s0 = inlined_call_operand.vmem [shape: f32[2,8,32], index: 0, kind: input, shape index: {}]   ;;  %s2124_s1 = inlined_call_operand.vmem [shape: f32[7,128], index: 1, kind: input, shape index: {}]   ;;  %s2125_s2 = inlined_call_operand.vmem [shape: f32[4,8,8], index: 2, kind: input, shape index: {}]   ;;  %s2126_s3 = inlined_call_operand.vmem [shape: f32[32,256], index: 3, kind: input, shape index: {}]   ;;  %s2127_s4 = inlined_call_operand.vmem [shape: f32[128,32], index: 4, kind: input, shape index: {}]   ;;  %s2128_s5 = inlined_call_operand.hbm [shape: f32[2,8,32], index: 5, kind: output, shape index: {}]  }
   0x1   :  { %12 = vsyncpa [#allocation3 + $0x1], 0  ;;  %s1798_s18 = smov 0   ;;  %s1800_s19 = smov 0  }
   0x2   :  { %s1802_s20 = smov 0   ;;  %s1804_s21 = smov 0  }
   0x3 LB: > { %s1819_s22 = sadd.s32 4294967295, %s1753_s21   ;;  %s1380_s23 = sadd.s32 4294967294, %s1753_s21   ;;  %s1753_s21 = sphi %s1804_s21, %s2134_s21   ;;  %s1749_s20 = sphi %s1802_s20, %s2133_s20   ;;  %s1745_s19 = sphi %s1800_s19, %s2132_s19   ;;  %s1741_s18 = sphi %s1798_s18, %s2131_s18  }
   0x4   : > { %s1823_s24 = sadd.s32 1, %s1753_s21   ;;  %s135_s25 = sadd.s32 1, %s1749_s20 }
   0x5   : > { %s132_s26 = ssub.s32 %s1753_s21, %s1823_s24  ;;  %p145_p0 = scmp.ne.s32.totalorder %s1749_s20, %s1745_s19 }
   0x6   : > { %p133_p1 = scmp.eq.s32.totalorder %s132_s26, 0  ;;  %p146_p2 = scmp.eq.s32.totalorder %s1819_s22, 1 }
   0x7   : > { %p151_p3 = scmp.ne.s32.totalorder %s1745_s19, %s1741_s18  ;;  %p152_p4 = scmp.eq.s32.totalorder %s1380_s23, 1 }
   0x8   : > { %s1834_s27 = scalar_select %p133_p1, %s1749_s20, %s135_s25  }
   0x9   : > { %p1836_p5 = por %p146_p2, %p145_p0  ;;  %p1840_p6 = por %p152_p4, %p151_p3 }
   0xa   : > { %p1383_p7 = scmp.ge.s32.totalorder %s1753_s21, 1  ;;  %p189_p8 = scmp.lt.s32.totalorder %s1753_s21, 3 }
   0xc   : > { %p190_p9 = pnand %p1383_p7, %p189_p8 }
   0xd   : > { %p216_p10 = scmp.lt.s32.totalorder (!%p190_p9), %s1819_s22, 1  ;;  %vm228_vm0 = vcmask (!%p190_p9), 261120   ;;  %v1860_v7 = vld [vmem:[%s2126_s3] sm:$0xff] (!%p190_p9)  ;;  %v1865_v8 = vld [vmem:[%s2126_s3 + $0x10] sm:$0xff] (!%p190_p9)  ;;  %v1755_v10 = vmov (!%p190_p9), 0.0|0.0   ;;  %vm1756_vm1 = vmmov (!%p190_p9), 0  }
   0xe   : > { %193 = sbr.rel (%p190_p9) target bundleno = 2623 (0xa3f), region = 40  ;;  %v1870_v9 = vld [vmem:[%s2126_s3 + $0x20] sm:$0xff] (!%p190_p9)  ;;  %1568 = vmatprep.subr.bf16.mxu1 (!%p190_p9), %v1755_v10  ;;  %v1569_v11 = vpack.c.bf16 (!%p190_p9), %v1865_v8, %v1860_v7  ;;  %v1878_v12 = vld [vmem:[%s2126_s3 + $0x30] sm:$0xff] (!%p190_p9)  ;;  %v1757_v13 = vmov (!%p190_p9), 0.0   ;;  %s1759_s7 = smov (!%p190_p9), 120   ;;  %vm343_vm2 = vcmask (!%p190_p9), 64512  }
   0xf   : > { %1468 = vmatprep.mubr.msk.f32.mxu1 (!%p190_p9), %vm1756_vm1, %v1757_v13  ;;  %1481 = vmatprep.subr.mxu0 (!%p190_p9), %v1757_v13  ;;  %v1572_v14 = vpack.c.bf16 (!%p190_p9), %v1878_v12, %v1870_v9  ;;  %v1386_v19 = vld [vmem:[%s2124_s1] ss:$0 sm:$0xff] (!%p190_p9)  ;;  %v1387_v21 = vld [vmem:[%s2124_s1 + $0x1] ss:$0 sm:$0xff] (!%p190_p9)  ;;  %s1760_s8 = smov (!%p190_p9), 112   ;;  %v338_v38 = vld [vmem:[%s2125_s2 + $0x8] sm:$0xff] (!%p190_p9) }
  0x10   : > { %1483 = vmatprep.mubr.msk.f32.mxu0 (!%p190_p9), %vm1756_vm1, %v1757_v13  ;;  %1570 = vmatpush3.bf16.msra.mxu1 (!%p190_p9), %v1569_v11  ;;  %v337_v33 = vld [vmem:[%s2125_s2] sm:$0xff] (!%p190_p9)  ;;  %v339_v42 = vld [vmem:[%s2125_s2 + $0x10] sm:$0xff] (!%p190_p9)  ;;  %v340_v47 = vld [vmem:[%s2125_s2 + $0x18] sm:$0xff] (!%p190_p9)  ;;  %s1762_s23 = smov (!%p190_p9), 64   ;;  %s1763_s25 = smov (!%p190_p9), 32   ;;  %vm1007_vm3 = vcmask (!%p190_p9), 130048  }
  0x11   : > { %1571 = vmatprep.subr.bf16.mxu1 (!%p190_p9), %v1755_v10  ;;  %s1764_s26 = smov (!%p190_p9), 8   ;;  %vm1009_vm4 = vcmask (!%p190_p9), 195584   ;;  %s1409_s11 = sshll.u32 (!%p190_p9), %s1819_s22, 7 }
  0x12   : > { %s2080_s16 = scalar_lea.hbm (!%p190_p9), %s2128_s5, %s1409_s11 }
  0x14   : > { %1573 = vmatpush3.bf16.msra.mxu1 (!%p190_p9), %v1572_v14 }
  0x15   : > { %s217_s30 = scalar_select %p216_p10, %s1819_s22, 1  ;;  %1471 = vmatprep.subr.mxu1 %v1757_v13 }
  0x17   : > { %s1385_s6 = sshll.u32 %s217_s30, 3  ;;  %s1765_s30 = smov 16  }
  0x18   : > { %s219_s9 = scalar_lea.vmem %s2123_s0, %s1385_s6  ;;  %s1758_s6 = smov 104  }
  0x19   : > { %v1851_v0 = vld [vmem:[%s219_s9] sm:$0xff]  ;;  %s1761_s9 = smov 96  }
  0x1a   : > { %v229_v1 = vsel %vm228_vm0, %v1851_v0, 0.0 }
  0x1b   : > { %230 = vadd.xlane.f32.xlu0 %v229_v1 }
  0xa8   : > { %v231_v2 = vpop.xlane.xlu0 %230 }
  0xa9   : > { %v233_v3 = vmul.f32 0.03125, %v231_v2 }
  0xab   : > { %v234_v4 = vsub.f32 %v1851_v0, %v233_v3 }
  0xad   : > { %v235_v5 = vmul.f32 %v234_v4, %v234_v4 }
  0xaf   : > { %v236_v6 = vsel %vm228_vm0, %v235_v5, 0.0 }
  0xb0   : > { %237 = vadd.xlane.f32.xlu0 %v236_v6 }
 0x13d   : > { %v238_v15 = vpop.xlane.xlu0 %237 }
 0x13e   : > { %v239_v16 = vmul.f32 0.03125, %v238_v15 }
 0x140   : > { %v240_v17 = vadd.f32 1e-05, %v239_v16 }
 0x142   : > { %1671 = vrsqrt.f32 %v240_v17 }
 0x14c   : > { %v1672_v18 = vpop.eup %1671 }
 0x14d   : > { %v242_v20 = vmul.f32 %v1672_v18, %v234_v4 }
 0x14f   : > { %v247_v22 = vmul.f32 %v1386_v19, %v242_v20  ;;  %v1661_v20 = vpack.i.bf16 %v1865_v8, %v1860_v7 }
 0x151   : > { %v252_v23 = vadd.f32 %v1387_v21, %v247_v22 }
 0x153   : > { %1469 = vmatmul.mubr.msk.f32.vlgmr.msra.gmra.mrb[0].mxu1 %vm228_vm0, %v252_v23 }
 0x154   : > { %1473 = vmatprep.mubr.msk.f32.mxu1 %vm1756_vm1, %v1757_v13 }
 0x226   : > { %v326_v24 = vpop.f32.mrb[0].mxu1 }
 0x227   : > { %335 = vrot.lane.b32.xlu0 %v326_v24, %s1758_s6  ;;  %331 = vrot.lane.b32.xlu1 %v326_v24, %s1759_s7  ;;  %v1470_v25 = vpop.f32.mrb[1].mxu1  ;;  %s1766_s6 = smov 24   ;;  %s213_s7 = sand.u32 1, %s1745_s19  }
 0x228   : > { %s1308_s17 = scalar_lea.sflag [#allocation3], %s213_s7 }
 0x22b   : > { %333 = vrot.lane.b32.xlu1 %v326_v24, %s1760_s8  ;;  %s1384_s8 = sshll.u32 %s213_s7, 3 }
 0x22c   : > { %s215_s12 = scalar_lea.vmem [#allocation2], %s1384_s8 }
 0x22d   : > { %s1321_s13 = sshll.u32 %s215_s12, 4  ;;  %s2082_s13 = int_to_ptr.vmem [resolvable:$true] %s1321_s13 }
 0x22e   : > { %s1691_s22 = scalar_lea.vmem %s2082_s13, 128 }
 0x22f   : > { %341 = vrot.lane.b32.xlu1 %v326_v24, %s1761_s9  ;;  %p1692_p11 = scmp.ne.s32.totalorder %s2082_s13, %s1691_s22 }
 0x231   : > { %p1693_p12 = pnand %p1692_p11, %p1836_p5 }
 0x233   : > { %p1694_p13 = pneg %p1693_p12 }
 0x299   : > { %v1898_v26 = vpop.permute.xlu1 %331  ;;  %v1904_v28 = vpop.permute.xlu0 %335 }
 0x29a   : > { %418 = vrot.lane.b32.xlu1 %v1898_v26, %s1761_s9 }
 0x29d   : > { %v1901_v27 = vpop.permute.xlu1 %333 }
 0x29e   : > { %494 = vrot.lane.b32.xlu1 %v1901_v27, %s1761_s9 }
 0x2a1   : > { %v342_v29 = vpop.permute.xlu1 %341 }
 0x2a2   : > { %570 = vrot.lane.b32.xlu1 %v1904_v28, %s1761_s9  ;;  %1472 = vmatpush3.xpose.msk.msra.mxu1 %vm343_vm2, %v342_v29 }
 0x2a3   : > { %1476 = vmatprep.subr.mxu1 %v1757_v13 }
 0x2a5   : > { %1474 = vmatmul.mubr.msk.f32.vlgmr.msra.gmra.mrb[2].mxu1 %vm343_vm2, %v326_v24 }
 0x2a6   : > { %1478 = vmatprep.mubr.msk.f32.mxu1 %vm1756_vm1, %v1757_v13 }
 0x30c   : > { %v419_v30 = vpop.permute.xlu1 %418 }
 0x30d   : > { %1477 = vmatpush3.xpose.msk.msra.mxu1 %vm343_vm2, %v419_v30 }
 0x30e   : > { %1486 = vmatprep.subr.mxu1 %v1757_v13 }
 0x310   : > { %1479 = vmatmul.mubr.msk.f32.vlgmr.msra.gmra.mrb[4].mxu1 %vm343_vm2, %v1898_v26  ;;  %v495_v31 = vpop.permute.xlu1 %494 }
 0x311   : > { %1482 = vmatpush3.xpose.msk.msra.mxu0 %vm343_vm2, %v495_v31  ;;  %1488 = vmatprep.mubr.msk.f32.mxu1 %vm1756_vm1, %v1757_v13  ;;  %v1666_v31 = vpack.i.bf16 %v1878_v12, %v1870_v9 }
 0x312   : > { %1491 = vmatprep.subr.mxu0 %v1757_v13 }
 0x314   : > { %1484 = vmatmul.mubr.msk.f32.vlgmr.msra.gmra.mrb[0].mxu0 %vm343_vm2, %v1901_v27  ;;  %v571_v32 = vpop.permute.xlu1 %570 }
 0x315   : > { %1487 = vmatpush3.xpose.msk.msra.mxu1 %vm343_vm2, %v571_v32  ;;  %1493 = vmatprep.mubr.msk.f32.mxu0 %vm1756_vm1, %v1757_v13 }
 0x316   : > { %1496 = vmatprep.subr.mxu1 %v1757_v13 }
 0x318   : > { %1489 = vmatmul.mubr.msk.f32.vlgmr.msra.gmra.mrb[6].mxu1 %vm343_vm2, %v1904_v28 }
 0x319   : > { %1498 = vmatprep.mubr.msk.f32.mxu1 %vm1756_vm1, %v1757_v13 }
 0x378   : > { %v414_v34 = vpop.f32.mrb[2].mxu1 }
 0x379   : > { %v415_v35 = vadd.f32 %v414_v34, %v337_v33  ;;  %v1475_v36 = vpop.f32.mrb[3].mxu1 }
 0x37b   : > { %v646_v37 = vsel %vm343_vm2, %v415_v35, -inf }
 0x37c   : > { %647 = vmax.xlane.f32.xlu1 %v646_v37 }
 0x3e3   : > { %v490_v39 = vpop.f32.mrb[4].mxu1 }
 0x3e4   : > { %v491_v40 = vadd.f32 %v490_v39, %v338_v38  ;;  %v1480_v41 = vpop.f32.mrb[5].mxu1 }
 0x3e6   : > { %v649_v43 = vsel %vm343_vm2, %v491_v40, -inf }
 0x3e7   : > { %v566_v44 = vpop.f32.mrb[0].mxu0  ;;  %650 = vmax.xlane.f32.xlu0 %v649_v43 }
 0x3e8   : > { %v567_v45 = vadd.f32 %v566_v44, %v339_v42  ;;  %v1485_v46 = vpop.f32.mrb[1].mxu0 }
 0x3ea   : > { %v652_v48 = vsel %vm343_vm2, %v567_v45, -inf }
 0x3eb   : > { %653 = vmax.xlane.f32.xlu1 %v652_v48  ;;  %v642_v49 = vpop.f32.mrb[6].mxu1 }
 0x3ec   : > { %v643_v50 = vadd.f32 %v642_v49, %v340_v47  ;;  %v1490_v51 = vpop.f32.mrb[7].mxu1 }
 0x3ee   : > { %v655_v52 = vsel %vm343_vm2, %v643_v50, -inf }
 0x3ef   : > { %656 = vmax.xlane.f32.xlu0 %v655_v52  ;;  %v1402_v52 = vld [vmem:[%s2124_s1 + $0x2] ss:$0 sm:$0xff] }
 0x3fc   : > { %690 = vrot.lane.b32.xlu1 %v326_v24, %s1762_s23 }
 0x409   : > { %v648_v53 = vpop.xlane.xlu1 %647 }
 0x40a   : > { %v658_v54 = vsub.f32 %v415_v35, %v648_v53 }
 0x40c   : > { %v662_v55 = vmul.f32 1.442695, %v658_v54 }
 0x40e   : > { %1673 = vpow2.f32 %v662_v55 }
 0x418   : > { %v1674_v56 = vpop.eup %1673 }
 0x419   : > { %v670_v57 = vsel %vm343_vm2, %v1674_v56, 0.0 }
 0x420   : > { %671 = vadd.xlane.f32.xlu1 %v670_v57 }
 0x474   : > { %v651_v58 = vpop.xlane.xlu0 %650 }
 0x475   : > { %v659_v59 = vsub.f32 %v491_v40, %v651_v58 }
 0x477   : > { %v664_v60 = vmul.f32 1.442695, %v659_v59 }
 0x478   : > { %v654_v61 = vpop.xlane.xlu1 %653 }
 0x479   : > { %1675 = vpow2.f32 %v664_v60  ;;  %v660_v62 = vsub.f32 %v567_v45, %v654_v61 }
 0x47b   : > { %v666_v63 = vmul.f32 1.442695, %v660_v62  ;;  %v1133_v62 = vld [vmem:[%s2126_s3 + $0x8] sm:$0xff] }
 0x47c   : > { %v691_v1 = vpop.permute.xlu1 %690  ;;  %v657_v2 = vpop.xlane.xlu0 %656 }
 0x47d   : > { %1677 = vpow2.f32 %v666_v63  ;;  %v661_v3 = vsub.f32 %v643_v50, %v657_v2  ;;  %1492 = vmatpush3.msra.mxu0 %v691_v1  ;;  %v1135_v1 = vld [vmem:[%s2126_s3 + $0x28] sm:$0xff]  ;;  %v1136_v2 = vld [vmem:[%s2126_s3 + $0x38] sm:$0xff] }
 0x47e   : > { %1501 = vmatprep.subr.mxu0 %v1757_v13 }
 0x47f   : > { %v668_v4 = vmul.f32 1.442695, %v661_v3  ;;  %v1584_v3 = vpack.c.bf16 %v1136_v2, %v1135_v1 }
 0x481   : > { %1679 = vpow2.f32 %v668_v4  ;;  %v1215_v4 = vld [vmem:[%s2127_s4] sm:$0xff] }
 0x483   : > { %v1676_v5 = vpop.eup %1675 }
 0x484   : > { %v673_v6 = vsel %vm343_vm2, %v1676_v5, 0.0 }
 0x485   : > { %674 = vadd.xlane.f32.xlu0 %v673_v6  ;;  %v1217_v6 = vld [vmem:[%s2127_s4 + $0x10] sm:$0xff] }
 0x487   : > { %v1678_v11 = vpop.eup %1677 }
 0x488   : > { %v676_v14 = vsel %vm343_vm2, %v1678_v11, 0.0 }
 0x489   : > { %677 = vadd.xlane.f32.xlu1 %v676_v14  ;;  %v1218_v14 = vld [vmem:[%s2127_s4 + $0x18] sm:$0xff] }
 0x48b   : > { %v1680_v15 = vpop.eup %1679 }
 0x48c   : > { %v679_v16 = vsel %vm343_vm2, %v1680_v15, 0.0 }
 0x48d   : > { %680 = vadd.xlane.f32.xlu0 %v679_v16  ;;  %v1219_v16 = vld [vmem:[%s2127_s4 + $0x20] sm:$0xff] }
 0x49a   : > { %842 = vrot.lane.b32.xlu1 %v1901_v27, %s1762_s23 }
 0x49e   : > { %918 = vrot.lane.b32.xlu1 %v1904_v28, %s1762_s23 }
 0x4a2   : > { %1667 = vrot.lane.b32.xlu1 %v1666_v31, %s1763_s25 }
 0x4a3   : > { %766 = vrot.lane.b32.xlu0 %v1898_v26, %s1762_s23  ;;  %s1767_s23 = smov [#allocation2]  }
 0x4a7   : > { %1662 = vrot.lane.b32.xlu0 %v1661_v20, %s1763_s25  ;;  %v1222_v20 = vld [vmem:[%s2127_s4 + $0x38] sm:$0xff]  ;;  %s1695_s25 = sshll.u32 %s1767_s23, 4  ;;  %s1696_s25 = int_to_ptr.vmem [resolvable:$false] %s1695_s25 }
 0x4a8   : > { %p1698_p0 = scmp.lt.s32.totalorder %s2082_s13, %s1696_s25 }
 0x4ad   : > { %v672_v17 = vpop.xlane.xlu1 %671 }
 0x4ae   : > { %1681 = vrcp.f32 %v672_v17  ;;  %v1220_v17 = vld [vmem:[%s2127_s4 + $0x28] sm:$0xff] }
 0x4b8   : > { %v1682_v18 = vpop.eup %1681 }
 0x4b9   : > { %v683_v19 = vmul.f32 %v1682_v18, %v1674_v56  ;;  %v1593_v18 = vpack.c.bf16 %v1220_v17, %v1219_v16 }
 0x4bb   : > { %1494 = vmatmul.mubr.msk.f32.vlgmr.msra.gmra.mrb[2].mxu0 %vm343_vm2, %v683_v19  ;;  %v1221_v19 = vld [vmem:[%s2127_s4 + $0x30] sm:$0xff] }
 0x4bc   : > { %1503 = vmatprep.mubr.msk.f32.mxu0 %vm1756_vm1, %v1757_v13 }
 0x512   : > { %v675_v21 = vpop.xlane.xlu0 %674 }
 0x513   : > { %1683 = vrcp.f32 %v675_v21  ;;  %v1596_v21 = vpack.c.bf16 %v1222_v20, %v1221_v19 }
 0x516   : > { %v678_v22 = vpop.xlane.xlu1 %677 }
 0x517   : > { %1685 = vrcp.f32 %v678_v22  ;;  %v1223_v22 = vld [vmem:[%s2127_s4 + $0x40] sm:$0xff] }
 0x51a   : > { %v843_v23 = vpop.permute.xlu1 %842  ;;  %v681_v24 = vpop.xlane.xlu0 %680 }
 0x51b   : > { %1687 = vrcp.f32 %v681_v24  ;;  %1502 = vmatpush3.msra.mxu0 %v843_v23  ;;  %v1224_v23 = vld [vmem:[%s2127_s4 + $0x48] sm:$0xff] }
 0x51c   : > { %1586 = vmatprep.subr.bf16.mxu0 %v1755_v10  ;;  %v1599_v24 = vpack.c.bf16 %v1224_v23, %v1223_v22 }
 0x51d   : > { %v1684_v25 = vpop.eup %1683 }
 0x51e   : > { %v685_v26 = vmul.f32 %v1684_v25, %v1676_v5  ;;  %v767_v27 = vpop.permute.xlu0 %766  ;;  %v919_v28 = vpop.permute.xlu1 %918  ;;  %v1216_v5 = vld [vmem:[%s2127_s4 + $0x8] sm:$0xff]  ;;  %v1225_v25 = vld [vmem:[%s2127_s4 + $0x50] sm:$0xff] }
 0x51f   : > { %1497 = vmatpush3.msra.mxu1 %v767_v27 }
 0x520   : > { %1499 = vmatmul.mubr.msk.f32.vlgmr.msra.gmra.mrb[8].mxu1 %vm343_vm2, %v685_v26  ;;  %1506 = vmatprep.subr.mxu1 %v1757_v13  ;;  %v1226_v26 = vld [vmem:[%s2127_s4 + $0x58] sm:$0xff] }
 0x521   : > { %v1686_v7 = vpop.eup %1685  ;;  %1507 = vmatpush3.msra.mxu1 %v919_v28  ;;  %1508 = vmatprep.mubr.msk.f32.mxu1 %vm1756_vm1, %v1757_v13  ;;  %v1602_v27 = vpack.c.bf16 %v1226_v26, %v1225_v25  ;;  %v1227_v28 = vld [vmem:[%s2127_s4 + $0x60] sm:$0xff] }
 0x522   : > { %v687_v8 = vmul.f32 %v1686_v7, %v1678_v11  ;;  %1574 = vmatprep.subr.bf16.mxu1 %v1755_v10  ;;  %v1663_v32 = vpop.permute.xlu0 %1662  ;;  %v1668_v38 = vpop.permute.xlu1 %1667  ;;  %v1587_v11 = vpack.c.bf16 %v1216_v5, %v1215_v4  ;;  %v1228_v7 = vld [vmem:[%s2127_s4 + $0x68] sm:$0xff] }
 0x523   : > { %v1665_v33 = vunpack.i.h.bf16 %v1663_v32  ;;  %v1664_v34 = vunpack.i.l.bf16 %v1663_v32  ;;  %v1670_v39 = vunpack.i.h.bf16 %v1668_v38  ;;  %v1669_v40 = vunpack.i.l.bf16 %v1668_v38  ;;  %v1230_v38 = vld [vmem:[%s2127_s4 + $0x78] sm:$0xff] }
 0x524   : > { %1504 = vmatmul.mubr.msk.f32.vlgmr.msra.gmra.mrb[4].mxu0 %vm343_vm2, %v687_v8  ;;  %v1605_v8 = vpack.c.bf16 %v1228_v7, %v1227_v28 }
 0x525   : > { %v1688_v29 = vpop.eup %1687  ;;  %1565 = vmatprep.mubr.msk.f32.mxu0 %vm1756_vm1, %v1757_v13  ;;  %v1575_v35 = vpack.c.bf16 %v1665_v33, %v1664_v34  ;;  %v1578_v41 = vpack.c.bf16 %v1670_v39, %v1669_v40  ;;  %1588 = vmatpush3.bf16.msra.mxu0 %v1587_v11  ;;  %v1403_v33 = vld [vmem:[%s2124_s1 + $0x3] ss:$0 sm:$0xff]  ;;  %v1405_v40 = vld [vmem:[%s2124_s1 + $0x6] ss:$0 sm:$0xff] }
 0x526   : > { %v689_v30 = vmul.f32 %v1688_v29, %v1680_v15  ;;  %v1590_v15 = vpack.c.bf16 %v1218_v14, %v1217_v6  ;;  %1589 = vmatprep.subr.bf16.mxu0 %v1755_v10 }
 0x528   : > { %1509 = vmatmul.mubr.msk.f32.vlgmr.msra.gmra.mrb[10].mxu1 %vm343_vm2, %v689_v30 }
 0x529   : > { %1519 = vmatprep.mubr.msk.f32.mxu1 %vm1756_vm1, %v1757_v13  ;;  %1576 = vmatpush3.bf16.msra.mxu1 %v1575_v35  ;;  %v1404_v35 = vld [vmem:[%s2124_s1 + $0x4] ss:$0 sm:$0xff] }
 0x52a   : > { %1577 = vmatprep.subr.bf16.mxu1 %v1755_v10  ;;  %1591 = vmatpush3.bf16.msra.mxu0 %v1590_v15 }
 0x52b   : > { %1592 = vmatprep.subr.bf16.mxu0 %v1755_v10 }
 0x52d   : > { %1579 = vmatpush3.bf16.msra.mxu1 %v1578_v41 }
 0x52e   : > { %1580 = vmatprep.subr.bf16.mxu1 %v1755_v10  ;;  %1594 = vmatpush3.bf16.msra.mxu0 %v1593_v18 }
 0x52f   : > { %1595 = vmatprep.subr.bf16.mxu0 %v1755_v10 }
 0x532   : > { %1597 = vmatpush3.bf16.msra.mxu0 %v1596_v21 }
 0x533   : > { %1598 = vmatprep.subr.bf16.mxu0 %v1755_v10 }
 0x536   : > { %1600 = vmatpush3.bf16.msra.mxu0 %v1599_v24 }
 0x537   : > { %1601 = vmatprep.subr.bf16.mxu0 %v1755_v10 }
 0x53a   : > { %1603 = vmatpush3.bf16.msra.mxu0 %v1602_v27 }
 0x53b   : > { %1604 = vmatprep.subr.bf16.mxu0 %v1755_v10 }
 0x53e   : > { %1606 = vmatpush3.bf16.msra.mxu0 %v1605_v8 }
 0x53f   : > { %1607 = vmatprep.subr.bf16.mxu0 %v1755_v10 }
 0x58e   : > { %v762_v36 = vpop.f32.mrb[2].mxu0 }
 0x58f   : > { %v1495_v37 = vpop.f32.mrb[3].mxu0 }
 0x5f3   : > { %v838_v42 = vpop.f32.mrb[8].mxu1 }
 0x5f4   : > { %995 = vrot.lane.b32.xlu0 %v838_v42, %s1764_s26  ;;  %v1500_v9 = vpop.f32.mrb[9].mxu1  ;;  %s1697_s26 = scalar_lea.vmem %s1696_s25, 256 }
 0x5f5   : > { %p1699_p1 = scmp.lt.s32.totalorder %s1697_s26, %s1691_s22 }
 0x5f7   : > { %v914_v12 = vpop.f32.mrb[4].mxu0  ;;  %p1700_p2 = por %p1699_p1, %p1698_p0 }
 0x5f8   : > { %999 = vrot.lane.b32.xlu1 %v914_v12, %s1765_s30  ;;  %v1505_v43 = vpop.f32.mrb[5].mxu0 }
 0x5f9   : > { %v1407_v43 = vld [vmem:[%s2124_s1 + $0x5] ss:$0 sm:$0xff]  ;;  %p1701_p3 = pnand %p1700_p2, %p1694_p13 }
 0x5fb   : > { %v990_v44 = vpop.f32.mrb[10].mxu1 }
 0x5fc   : > { %1003 = vrot.lane.b32.xlu0 %v990_v44, %s1766_s6  ;;  %v1510_v45 = vpop.f32.mrb[11].mxu1 }
 0x666   : > { %v996_v46 = vpop.permute.xlu0 %995 }
 0x667   : > { %v1006_v48 = vsel %vm343_vm2, %v762_v36, %v996_v46 }
 0x66a   : > { %v1000_v47 = vpop.permute.xlu1 %999 }
 0x66b   : > { %v1008_v49 = vsel %vm1007_vm3, %v1006_v48, %v1000_v47 }
 0x66e   : > { %v1004_v50 = vpop.permute.xlu0 %1003 }
 0x66f   : > { %v1010_v51 = vsel %vm1009_vm4, %v1008_v49, %v1004_v50 }
 0x670   : > { %1520 = vmatmul.mubr.msk.f32.vlgmr.msra.gmra.mrb[12].mxu1 %vm228_vm0, %v1010_v51 }
 0x671   : > { %1530 = vmatprep.mubr.msk.f32.mxu1 %vm1756_vm1, %v1757_v13 }
 0x743   : > { %v1100_v53 = vpop.f32.mrb[12].mxu1 }
 0x744   : > { %v1104_v54 = vadd.f32 %v1100_v53, %v1851_v0  ;;  %v1521_v55 = vpop.f32.mrb[13].mxu1  ;;  %v1134_v0 = vld [vmem:[%s2126_s3 + $0x18] sm:$0xff] }
 0x745   : > { %v1581_v63 = vpack.c.bf16 %v1134_v0, %v1133_v62 }
 0x746   : > { %v1987_v56 = vadd.f32 %v1402_v52, %v1104_v54 }
 0x747   : > { %1582 = vmatpush3.bf16.msra.mxu1 %v1581_v63 }
 0x748   : > { %v1110_v57 = vsel %vm228_vm0, %v1987_v56, 0.0  ;;  %1583 = vmatprep.subr.bf16.mxu1 %v1755_v10  ;;  %v1229_v10 = vld [vmem:[%s2127_s4 + $0x70] sm:$0xff] }
 0x749   : > { %1111 = vadd.xlane.f32.xlu1 %v1110_v57  ;;  %v1608_v39 = vpack.c.bf16 %v1230_v38, %v1229_v10 }
 0x74b   : > { %1585 = vmatpush3.bf16.msra.mxu1 %v1584_v3  ;;  %1609 = vmatpush3.bf16.msra.mxu0 %v1608_v39 }
 0x7d6   : > { %v1112_v58 = vpop.xlane.xlu1 %1111 }
 0x7d7   : > { %v1113_v59 = vmul.f32 0.03125, %v1112_v58 }
 0x7d9   : > { %v1114_v60 = vsub.f32 %v1987_v56, %v1113_v59 }
 0x7db   : > { %v1115_v61 = vmul.f32 %v1114_v60, %v1114_v60 }
 0x7dd   : > { %v1116_v13 = vsel %vm228_vm0, %v1115_v61, 0.0 }
 0x7de   : > { %1117 = vadd.xlane.f32.xlu0 %v1116_v13 }
 0x86b   : > { %v1118_v29 = vpop.xlane.xlu0 %1117 }
 0x86c   : > { %v1119_v30 = vmul.f32 0.03125, %v1118_v29 }
 0x86e   : > { %v1120_v31 = vadd.f32 1e-05, %v1119_v30 }
 0x870   : > { %1689 = vrsqrt.f32 %v1120_v31 }
 0x87a   : > { %v1690_v32 = vpop.eup %1689 }
 0x87b   : > { %v1122_v34 = vmul.f32 %v1690_v32, %v1114_v60 }
 0x87d   : > { %v1127_v36 = vmul.f32 %v1403_v33, %v1122_v34 }
 0x87f   : > { %v1132_v37 = vadd.f32 %v1404_v35, %v1127_v36 }
 0x881   : > { %1531 = vmatmul.mubr.msk.f32.vlgmr.msra.gmra.mrb[14].mxu1 %vm228_vm0, %v1132_v37 }
 0x954   : > { %v1210_v41 = vpop.f32.mrb[14].mxu1 }
 0x955   : > { %v1211_v42 = vadd.f32 %v1405_v40, %v1210_v41  ;;  %v1532_v9 = vpop.f32.mrb[15].mxu1 }
 0x957   : > { %v1214_v12 = vmax.f32 %v1211_v42, 0.0 }
 0x959   : > { %1566 = vmatmul.mubr.f32.vlgmr.msra.gmra.mrb[6].mxu0 %v1214_v12 }
 0xa2c   : > { %v1301_v44 = vpop.f32.mrb[6].mxu0 }
 0xa2d   : > { %v1302_v45 = vadd.f32 %v1407_v43, %v1301_v44  ;;  %v1567_v46 = vpop.f32.mrb[7].mxu0 }
 0xa2f   : > { %v1305_v47 = vadd.f32 %v1302_v45, %v1987_v56 }
 0xa31   : > { %1306 = vst.msk [vmem:[%s215_s12] sm:$0xff] %vm228_vm0, %v1305_v47 }
 0xa32   : > { %1704 = shalt.err (!%p1701_p3)
}
 0xa33   : > { %s1705_s30 = scalar_lea.hbm %s2080_s16, 128  ;;  %s1709_s8 = scalar_lea.hbm %s2128_s5, 256 }
 0xa34   : > { %p1706_p4 = scmp.ne.s32.totalorder %s2080_s16, %s1705_s30  ;;  %p1710_p9 = scmp.lt.u32.totalorder %s2080_s16, %s2128_s5 }
 0xa35   : > { %p1711_p10 = scmp.lt.u32.totalorder %s1709_s8, %s1705_s30  ;;  %p1713_p12 = scmp.lt.u32.totalorder %s1705_s30, %s2080_s16 }
 0xa36   : > { %p1707_p7 = pnand %p1706_p4, %p1836_p5 }
 0xa37   : > { %p1712_p11 = por %p1711_p10, %p1710_p9 }
 0xa38   : > { %p1708_p8 = pneg %p1707_p7 }
 0xa39   : > { %p1714_p13 = por %p1713_p12, %p1712_p11 }
 0xa3b   : > { %p1715_p0 = pnand %p1714_p13, %p1708_p8 }
 0xa3d   : > { %1718 = shalt.err (!%p1715_p0)
}
 0xa3e   : > { %1610 = dma.vmem_to_hbm [thread:$0]  (%p1836_p5), %s2082_s13, 128, %s2080_s16, %s1308_s17  }
 0xa3f PF: > { %p1616_p1 = scmp.ge.s32.totalorder %s1753_s21, 2  ;;  %s1333_s11 = sand.u32 1, %s1741_s18  }
 0xa40   : > { %s1334_s12 = scalar_lea.sflag [#allocation3], %s1333_s11 }
 0xa41   : > { %p1613_p2 = pnand %p1616_p1, %p1840_p6 }
 0xa43   : > { %1736 = dma.done.wait (!%p1613_p2), %s1334_s12, 128  }
 0xa44   : > { %1738 = vsyncadd (!%p1613_p2), %s1334_s12, 4294967168  ;;  %p15_p3 = scmp.ge.s32.totalorder %s1823_s24, 4   ;;  %s2131_s18 = smov %s1745_s19 }
 0xa45   : > { %s2132_s19 = smov %s1749_s20  ;;  %s2133_s20 = smov %s1834_s27 }
 0xa46   : > { %s2134_s21 = smov %s1823_s24  ;;  %17 = sbr.rel (!%p15_p3) target bundleno = 3 (0x3), region = 75 }
 0xa4d   :  { %1339 = vsyncpa [#allocation3], 1 }
 0xa4e   :  { %1341 = vsyncpa [#allocation3 + $0x1], 1 }

</bundles_post_ra>
